<compile_context>
chip_gen: v6e
topology: v6e:2x2x1
jax: 0.10.0
libtpu: 0.0.40
codegen_flags: <defaults>
</compile_context>

<pallas_src>
import jax
import jax.numpy as jnp
from jax.experimental import pallas as pl
from jax.experimental.pallas import tpu as pltpu

C_OUT = 500          # conv output channels
C_PAD = 512          # channels padded to a multiple of 128 lanes
KH = 128             # conv kernel height
H_IN = 129           # input height implied by the view(-1, 500*2*1)
H_OUT = 2            # H_IN - KH + 1
W_IN = 1             # input width implied by kernel_size=(128, 1)


def convnn_kernel(xs_ref, wc_ref, params_ref, bfc_ref, out_ref):
    # xs:     (2, TB, 128) matmul dtype; xs[0] = x[n, 0:128], xs[1] = x[n, 1:129]
    # wc:     (128, 512)   conv weight transposed, channels zero-padded 500 -> 512
    # params: (8, 512) f32 row0 = conv bias, row1 = fc weight (h=0), row2 = fc weight (h=1)
    # bfc:    (1, 1)   f32 fc bias scalar (SMEM)
    # out:    (TB, 1)  f32
    _, tb, kh = xs_ref.shape

    # Single fused MXU matmul over both conv windows (M-stacked halves).
    x2 = xs_ref[...].reshape(2 * tb, kh)                              # no-op reshape
    a = jnp.dot(x2, wc_ref[...], preferred_element_type=jnp.float32)  # (2*TB, 512) f32

    bc = params_ref[0:1, :]
    w0 = params_ref[1:2, :]
    w1 = params_ref[2:3, :]

    # Bias, ReLU, fc weighting and pair-sum of the two conv rows (f32, on VPU).
    r0 = jnp.maximum(a[:tb, :] + bc, 0.0)
    r1 = jnp.maximum(a[tb:, :] + bc, 0.0)
    q = r0 * w0 + r1 * w1                                             # (TB, 512)

    pre = jnp.sum(q, axis=-1, keepdims=True) + bfc_ref[0, 0]          # (TB, 1)
    # sigmoid: exp on EUP + exact reciprocal (approx=True would break tolerance)
    out_ref[...] = pl.reciprocal(1.0 + jnp.exp(-pre), approx=False)


def _round_up(v, m):
    return (v + m - 1) // m * m


def convnn_forward(x, conv_w, conv_b, fc_w, fc_b, *, block_b=1024,
                   matmul_dtype=jnp.bfloat16):
    """x: (B, 1, 129, 1) float32. Returns (B, 1) float32."""
    B = x.shape[0]
    x2 = x[:, 0, :, 0].astype(jnp.float32)                            # (B, 129)

    # Batch tile: multiple of 16 sublanes (bf16 packing).  Cap block_b at 2048 so
    # f32 intermediates stay well inside v7x's 64 MiB VMEM, and cap TB so the grid
    # always has >= 2 steps (keeps v7x's second TensorCore busy at small batch).
    block_b = min(block_b, 2048)
    TB = min(block_b, max(16, _round_up(pl.cdiv(B, 2), 16)))
    num_tiles = max(2, pl.cdiv(B, TB))
    B_pad = num_tiles * TB

    x2p = jnp.pad(x2, ((0, B_pad - B), (0, 0)))                       # (B_pad, 129)

    # Both shifted 128-wide conv windows stacked window-major along a leading axis
    # (NOT interleaved) -> in-kernel (2*TB,128) M-stack for a single fused dot.
    xs = jnp.stack([x2p[:, 0:KH], x2p[:, 1:1 + KH]], axis=0)          # (2, B_pad, 128)
    xs = xs.astype(matmul_dtype)

    # Conv weight (500,1,128,1) -> (128, 512), channel-padded with zeros.
    wc = conv_w.reshape(C_OUT, KH).T.astype(jnp.float32)
    wc = jnp.pad(wc, ((0, 0), (0, C_PAD - C_OUT))).astype(matmul_dtype)  # (128, 512)

    # Constant params block (kept f32): row0 conv bias, rows1-2 fc weights
    # (torch .view flat index j = c*2 + h).
    bc = jnp.pad(conv_b.astype(jnp.float32), (0, C_PAD - C_OUT))      # (512,)
    wfc_hc = fc_w.reshape(C_OUT, H_OUT).T.astype(jnp.float32)         # (2, 500)
    wfc_hc = jnp.pad(wfc_hc, ((0, 0), (0, C_PAD - C_OUT)))            # (2, 512)
    params = jnp.zeros((8, C_PAD), jnp.float32).at[0].set(bc).at[1:3].set(wfc_hc)

    bfc = fc_b.reshape(1, 1).astype(jnp.float32)                      # (1, 1) scalar

    out = pl.pallas_call(
        convnn_kernel,
        out_shape=jax.ShapeDtypeStruct((B_pad, 1), jnp.float32),
        grid_spec=pltpu.PrefetchScalarGridSpec(
            num_scalar_prefetch=0,
            grid=(num_tiles,),
            in_specs=[
                pl.BlockSpec((2, TB, KH), lambda i: (0, i, 0)),           # xs tile
                pl.BlockSpec((KH, C_PAD), lambda i: (0, 0)),              # wc (resident)
                pl.BlockSpec((8, C_PAD), lambda i: (0, 0)),               # params (resident)
                pl.BlockSpec(memory_space=pltpu.MemorySpace.SMEM),        # fc bias scalar
            ],
            out_specs=pl.BlockSpec((TB, 1), lambda i: (i, 0)),
        ),
        compiler_params=pltpu.CompilerParams(
            dimension_semantics=("parallel",),
            vmem_limit_bytes=48 * 1024 * 1024,
        ),
    )(xs, wc, params, bfc)

    return out[:B]


def convnn_ref(x, conv_w, conv_b, fc_w, fc_b):
    """Pure-JAX reference matching the PyTorch forward exactly."""
    B = x.shape[0]
    x2 = x[:, 0, :, 0]
    patches = jnp.stack([x2[:, h:h + KH] for h in range(H_OUT)], axis=1)  # (B, 2, 128)
    conv = jnp.einsum("bhk,ck->bch", patches, conv_w.reshape(C_OUT, KH))
    conv = conv + conv_b[None, :, None]                                   # (B, 500, 2)
    relu = jnp.maximum(conv, 0.0)
    flat = relu.reshape(B, C_OUT * H_OUT)        # channel-major, same as torch .view
    y = flat @ fc_w.T + fc_b
    return jax.nn.sigmoid(y)


if __name__ == "__main__":
    key = jax.random.PRNGKey(0)
    k_x, k_cw, k_cb, k_fw, k_fb = jax.random.split(key, 5)

    B = 2
    x = jax.random.normal(k_x, (B, 1, H_IN, W_IN), dtype=jnp.float32)

    # deterministic synthetic parameters (shapes from ConvNN.__init__)
    conv_w = 0.05 * jax.random.normal(k_cw, (C_OUT, 1, KH, 1), dtype=jnp.float32)
    conv_b = 0.05 * jax.random.normal(k_cb, (C_OUT,), dtype=jnp.float32)
    fc_w = 0.05 * jax.random.normal(k_fw, (1, C_OUT * H_OUT), dtype=jnp.float32)
    fc_b = 0.05 * jax.random.normal(k_fb, (1,), dtype=jnp.float32)

    ref = convnn_ref(x, conv_w, conv_b, fc_w, fc_b)

    # Fast path: bf16 MXU inputs, f32 accumulation / epilogue (~1e-3 tolerance).
    out_bf16 = jax.block_until_ready(convnn_forward(x, conv_w, conv_b, fc_w, fc_b))
    assert out_bf16.shape == (B, 1), out_bf16.shape
    assert jnp.allclose(out_bf16, ref, atol=2e-3, rtol=2e-3), (out_bf16, ref)

    # Exact path: same kernel with f32 matmul inputs, matches reference at 1e-5.
    out_f32 = jax.block_until_ready(
        convnn_forward(x, conv_w, conv_b, fc_w, fc_b, matmul_dtype=jnp.float32))
    assert jnp.allclose(out_f32, ref, atol=1e-5, rtol=1e-5), (out_f32, ref)

    print("KERNEL_OK")
</pallas_src>

<mosaic_0001>
module attributes {stable_mosaic.version = 11 : i64} {
  func.func @convnn_kernel(%arg0: i32, %arg1: memref<2x16x128xbf16, #tpu.memory_space<vmem>>, %arg2: memref<128x512xbf16, #tpu.memory_space<vmem>>, %arg3: memref<8x512xf32, #tpu.memory_space<vmem>>, %arg4: memref<1x1xf32, #tpu.memory_space<smem>>, %arg5: memref<16x1xf32, #tpu.memory_space<vmem>>) attributes {dimension_semantics = [#tpu.dimension_semantics<parallel>], iteration_bounds = array<i64: 2>, scalar_prefetch = 0 : i64, scratch_operands = 0 : i64, tpu.core_type = #tpu.core_type<tc>, window_params = [{transform_indices = @transform_0, window_bounds = array<i64: 2, 16, 128>}, {pipeline_mode = #tpu.pipeline_mode<synchronous>, transform_indices = @transform_1, window_bounds = array<i64: 128, 512>}, {pipeline_mode = #tpu.pipeline_mode<synchronous>, transform_indices = @transform_2, window_bounds = array<i64: 8, 512>}, {transform_indices = @transform_3, window_bounds = array<i64: 1, 1>}, {transform_indices = @transform_4, window_bounds = array<i64: 16, 1>}]} {
    %c0 = arith.constant 0 : index
    %c0_0 = arith.constant 0 : index
    %c0_1 = arith.constant 0 : index
    %0 = vector.load %arg1[%c0, %c0_0, %c0_1] : memref<2x16x128xbf16, #tpu.memory_space<vmem>>, vector<2x16x128xbf16>
    %1 = vector.shape_cast %0 : vector<2x16x128xbf16> to vector<32x128xbf16>
    %c0_2 = arith.constant 0 : index
    %c0_3 = arith.constant 0 : index
    %2 = vector.load %arg2[%c0_2, %c0_3] : memref<128x512xbf16, #tpu.memory_space<vmem>>, vector<128x512xbf16>
    %cst = arith.constant dense<0.000000e+00> : vector<32x512xf32>
    %3 = tpu.matmul %1, %2, %cst {dimension_numbers = #tpu.dot_dimension_numbers<[1], [0], [0], [1], [0, 0, 1, 1], [], []>} : vector<32x128xbf16>, vector<128x512xbf16>, vector<32x512xf32> -> vector<32x512xf32>
    %c0_4 = arith.constant 0 : index
    %c0_5 = arith.constant 0 : index
    %4 = vector.load %arg3[%c0_4, %c0_5] : memref<8x512xf32, #tpu.memory_space<vmem>>, vector<1x512xf32>
    %c1 = arith.constant 1 : index
    %c0_6 = arith.constant 0 : index
    %5 = vector.load %arg3[%c1, %c0_6] : memref<8x512xf32, #tpu.memory_space<vmem>>, vector<1x512xf32>
    %c2 = arith.constant 2 : index
    %c0_7 = arith.constant 0 : index
    %6 = vector.load %arg3[%c2, %c0_7] : memref<8x512xf32, #tpu.memory_space<vmem>>, vector<1x512xf32>
    %7 = vector.extract_strided_slice %3 {offsets = [0, 0], sizes = [16, 512], strides = [1, 1]} : vector<32x512xf32> to vector<16x512xf32>
    %8 = vector.broadcast %4 : vector<1x512xf32> to vector<16x512xf32>
    %9 = arith.addf %7, %8 : vector<16x512xf32>
    %cst_8 = arith.constant 0.000000e+00 : f32
    %10 = vector.broadcast %cst_8 : f32 to vector<16x512xf32>
    %11 = arith.maximumf %9, %10 : vector<16x512xf32>
    %12 = vector.extract_strided_slice %3 {offsets = [16, 0], sizes = [16, 512], strides = [1, 1]} : vector<32x512xf32> to vector<16x512xf32>
    %13 = vector.broadcast %4 : vector<1x512xf32> to vector<16x512xf32>
    %14 = arith.addf %12, %13 : vector<16x512xf32>
    %cst_9 = arith.constant 0.000000e+00 : f32
    %15 = vector.broadcast %cst_9 : f32 to vector<16x512xf32>
    %16 = arith.maximumf %14, %15 : vector<16x512xf32>
    %17 = vector.broadcast %5 : vector<1x512xf32> to vector<16x512xf32>
    %18 = arith.mulf %11, %17 : vector<16x512xf32>
    %19 = vector.broadcast %6 : vector<1x512xf32> to vector<16x512xf32>
    %20 = arith.mulf %16, %19 : vector<16x512xf32>
    %21 = arith.addf %18, %20 : vector<16x512xf32>
    %cst_10 = arith.constant dense<0.000000e+00> : vector<16xf32>
    %22 = vector.multi_reduction <add>, %21, %cst_10 [1] : vector<16x512xf32> to vector<16xf32>
    %23 = vector.shape_cast %22 : vector<16xf32> to vector<16x1xf32>
    %c0_11 = arith.constant 0 : index
    %c0_12 = arith.constant 0 : index
    %24 = memref.load %arg4[%c0_11, %c0_12] : memref<1x1xf32, #tpu.memory_space<smem>>
    %25 = vector.broadcast %24 : f32 to vector<16x1xf32>
    %26 = arith.addf %23, %25 : vector<16x1xf32>
    %cst_13 = arith.constant 0.000000e+00 : f32
    %27 = vector.broadcast %cst_13 : f32 to vector<16x1xf32>
    %28 = arith.subf %27, %26 : vector<16x1xf32>
    %29 = math.exp %28 : vector<16x1xf32>
    %cst_14 = arith.constant 1.000000e+00 : f32
    %30 = vector.broadcast %cst_14 : f32 to vector<16x1xf32>
    %31 = arith.addf %30, %29 : vector<16x1xf32>
    %32 = tpu.reciprocal %31 : vector<16x1xf32> -> vector<16x1xf32>
    %c0_15 = arith.constant 0 : index
    %c0_16 = arith.constant 0 : index
    %33 = vector.load %arg5[%c0_15, %c0_16] : memref<16x1xf32, #tpu.memory_space<vmem>>, vector<16x1xf32>
    tpu.vector_store %arg5[%c0_15, %c0_16], %32 {strides = array<i32>} : memref<16x1xf32, #tpu.memory_space<vmem>>, vector<16x1xf32>,
    return
  }
  func.func @transform_0(%arg0: i32) -> (i32, i32, i32) {
    %c0_i32 = arith.constant 0 : i32
    %c0_i32_0 = arith.constant 0 : i32
    %c0_i32_1 = arith.constant 0 : i32
    return %c0_i32, %arg0, %c0_i32_0 : i32, i32, i32
  }
  func.func @transform_1(%arg0: i32) -> (i32, i32) {
    %c0_i32 = arith.constant 0 : i32
    %c0_i32_0 = arith.constant 0 : i32
    %c0_i32_1 = arith.constant 0 : i32
    return %c0_i32, %c0_i32_0 : i32, i32
  }
  func.func @transform_2(%arg0: i32) -> (i32, i32) {
    %c0_i32 = arith.constant 0 : i32
    %c0_i32_0 = arith.constant 0 : i32
    %c0_i32_1 = arith.constant 0 : i32
    return %c0_i32, %c0_i32_0 : i32, i32
  }
  func.func @transform_3(%arg0: i32) -> (i32, i32) {
    %c0_i32 = arith.constant 0 : i32
    %c0_i32_0 = arith.constant 0 : i32
    %c0_i32_1 = arith.constant 0 : i32
    return %c0_i32, %c0_i32_0 : i32, i32
  }
  func.func @transform_4(%arg0: i32) -> (i32, i32) {
    %c0_i32 = arith.constant 0 : i32
    %c0_i32_0 = arith.constant 0 : i32
    return %arg0, %c0_i32 : i32, i32
  }
}

</mosaic_0001>

<bundles_post_ra>
// kernel: tpu_custom_call.1
= control target key start
LH: loop header
LB: loop body
LE: loop exit
PB: predicated region body
PF: predicated region fallthrough
CT: control target
= control target key end

     0   :  { %s1281_s0 = inlined_call_operand.hbm [shape: bf16[2,32,128], index: 0, kind: input, shape index: {}]   ;;  %s1282_s1 = inlined_call_operand.hbm [shape: bf16[128,512], index: 1, kind: input, shape index: {}]   ;;  %s1283_s2 = inlined_call_operand.hbm [shape: f32[8,512], index: 2, kind: input, shape index: {}]   ;;  %s1284_s3 = inlined_call_operand.<no memory space> [shape: f32[1,1], index: 3, kind: input, shape index: {}]   ;;  %s1285_s4 = inlined_call_operand.vmem [shape: f32[32,1], index: 4, kind: output, shape index: {}]  }
   0x1   :  { %9 = sst [smem:[#allocation2]] %s1284_s3 }
   0x2   :  { %10 = vsyncpa [#allocation4], 0 }
   0x3   :  { %12 = vsyncpa [#allocation4 + $0x1], 0 }
   0x4   :  { %13 = vsyncpa [#allocation6], 0  ;;  %s1139_s17 = smov 0   ;;  %s1141_s18 = smov 0  }
   0x5   :  { %s1143_s19 = smov 0   ;;  %s1145_s20 = smov 0  }
   0x6 LB: > { %s825_s3 = sadd.s32 4294967295, %s1098_s20   ;;  %s1159_s21 = sadd.s32 1, %s1098_s20   ;;  %s1098_s20 = sphi %s1145_s20, %s1299_s20   ;;  %s1094_s19 = sphi %s1143_s19, %s1298_s19   ;;  %s1090_s18 = sphi %s1141_s18, %s1297_s18   ;;  %s1086_s17 = sphi %s1139_s17, %s1296_s17  }
   0x7   : > { %s23_s22 = ssub.s32 %s1098_s20, %s1159_s21  ;;  %s26_s23 = sadd.s32 1, %s1094_s19 }
   0x8   : > { %p24_p0 = scmp.eq.s32.totalorder %s23_s22, 0  ;;  %p33_p1 = scmp.ne.s32.totalorder %s1094_s19, %s1090_s18 }
   0x9   : > { %p34_p2 = scmp.eq.s32.totalorder %s1098_s20, 0  ;;  %p39_p3 = scmp.ne.s32.totalorder %s1090_s18, %s1086_s17 }
   0xa   : > { %s1169_s24 = scalar_select %p24_p0, %s1094_s19, %s26_s23  }
   0xb   : > { %p1171_p4 = por %p34_p2, %p33_p1  ;;  %p1177_p5 = scmp.eq.s32.totalorder %s825_s3, 0 }
   0xc   : > { %p827_p6 = scmp.ge.s32.totalorder %s1098_s20, 1  ;;  %p139_p7 = scmp.lt.s32.totalorder %s1098_s20, 3 }
   0xd   : > { %s1290_s26 = scalar_select %p1177_p5, 1, 0 }
   0xe   : > { %p1185_p8 = por %p1177_p5, %p39_p3  ;;  %p1189_p9 = pnand %p827_p6, %p139_p7 }
   0xf   : > { %s1100_s29 = smov [#allocation5]   ;;  %s1101_s6 = smov [#allocation7]  }
  0x10   : > { %s1291_s27 = scalar_select %p1185_p8, 1, 0 }
  0x11   : > { %s151_s30 = sshll.u32 %s1100_s29, 4  ;;  %p896_p10 = pneg %p1189_p9  ;;  %s152_s30 = int_to_ptr.vmem [resolvable:$true] %s151_s30 }
  0x12   : > { %s165_s7 = sshll.u32 %s1101_s6, 4  ;;  %s1019_s8 = scalar_lea.vmem %s152_s30, 4096  ;;  %s166_s7 = int_to_ptr.vmem [resolvable:$true] %s165_s7 }
  0x13   : > { %p1197_p11 = pnand %p896_p10, %p1177_p5  ;;  %p1020_p13 = scmp.ne.s32.totalorder %s152_s30, %s1019_s8 }
  0x14   : > { %p1027_p2 = scmp.lt.s32.totalorder %s152_s30, %s152_s30  ;;  %p1028_p3 = scmp.lt.s32.totalorder %s1019_s8, %s1019_s8 }
  0x15   : > { %p1010_p12 = pneg %p1197_p11 }
  0x16   : > { %p1029_p6 = por %p1028_p3, %p1027_p2 }
  0x17   : > { %p1022_p0 = pnand %p1020_p13, %p1010_p12 }
  0x19   : > { %p1023_p1 = pneg %p1022_p0 }
  0x1b   : > { %p1030_p7 = pnand %p1029_p6, %p1023_p1 }
  0x1d   : > { %1033 = shalt.err (!%p1030_p7)
}
  0x1e   : > { %s1102_s9 = smov 256   ;;  %s1103_s10 = smov 16  }
  0x1f   : > { %899 = dma.hbm_to_vmem [thread:$0]  (!%p1197_p11), %s1282_s1, 4096, %s152_s30, [#allocation6], %s1102_s9, %s1102_s9, %s1103_s10  }
  0x20   : > { %s1045_s13 = scalar_lea.vmem %s166_s7, 512  ;;  %p1053_p5 = scmp.lt.s32.totalorder %s166_s7, %s166_s7 }
  0x21   : > { %p1046_p10 = scmp.ne.s32.totalorder %s166_s7, %s1045_s13  ;;  %p1054_p8 = scmp.lt.s32.totalorder %s1045_s13, %s1045_s13 }
  0x23   : > { %p1048_p13 = pnand %p1046_p10, %p1010_p12  ;;  %p1055_p2 = por %p1054_p8, %p1053_p5 }
  0x25   : > { %p1049_p0 = pneg %p1048_p13 }
  0x27   : > { %p1056_p1 = pnand %p1055_p2, %p1049_p0 }
  0x29   : > { %1059 = shalt.err (!%p1056_p1)
}
  0x2a   : > { %902 = dma.hbm_to_vmem [thread:$0]  (!%p1197_p11), %s1283_s2, 512, %s166_s7, [#allocation6]  }
  0x2b   : > { %p830_p3 = scmp.ge.s32.totalorder %s1098_s20, 2 }
  0x2d   : > { %175 = sbr.rel (%p830_p3) target bundleno = 63 (0x3f), region = 28 }
  0x32   : > { %s179_s16 = sand.u32 1, %s1094_s19   ;;  %s878_s17 = sshll.u32 %s1098_s20, 7 }
  0x33   : > { %s831_s22 = sshll.u32 %s179_s16, 4  ;;  %s189_s30 = scalar_lea.hbm %s1281_s0, %s878_s17 }
  0x34   : > { %s883_s5 = scalar_select %p1171_p4, [#allocation0], [#allocation10] }
  0x35   : > { %s183_s6 = scalar_lea.vmem [#allocation3], %s831_s22  ;;  %s1104_s9 = smov 256  }
  0x36   : > { %s202_s7 = sshll.u32 %s183_s6, 4  ;;  %s194_s8 = sld [smem:[%s883_s5]]   ;;  %s203_s7 = int_to_ptr.vmem [resolvable:$true] %s202_s7 }
  0x37   : > { %884 = sst [smem:[#allocation9]] (%p1171_p4), %s1104_s9  ;;  %s1105_s10 = smov 128  }
  0x38   : > { %885 = sst [smem:[#allocation9 + $0x1]] (%p1171_p4), %s1105_s10  ;;  %s1106_s11 = smov 2  }
  0x39   : > { %886 = sst [smem:[#allocation9 + $0x2]] (%p1171_p4), %s1106_s11  ;;  %s1107_s12 = smov 64  }
  0x3a   : > { %887 = sst [smem:[#allocation9 + $0x3]] (%p1171_p4), %s1107_s12  ;;  %s1108_s14 = smov 4  }
  0x3b   : > { %888 = sst [smem:[#allocation9 + $0x4]] (%p1171_p4), %s1107_s12  ;;  %s180_s17 = scalar_lea.sflag [#allocation4], %s179_s16 }
  0x3c   : > { %s834_s13 = sshll.u32 %s194_s8, 26  ;;  %889 = sst [smem:[#allocation9 + $0x5]] (%p1171_p4), %s1108_s14 }
  0x3d   : > { %s835_s15 = sadd.s32 134217728, %s834_s13  ;;  %s1109_s22 = smov 131072  }
  0x3e   : > { %890 = dma.general (%p1171_p4), %s189_s30, 256, %s203_s7, %s180_s17, %s1109_s22, [#allocation9], %s835_s15, 0  }
  0x3f PF: > { %227 = sbr.rel (%p1189_p9) target bundleno = 502 (0x1f6), region = 36  ;;  %s229_s23 = sand.u32 (!%p1189_p9), 1, %s1090_s18  }
  0x40   : > { %s1244_s29 = sshll.u32 (!%p1189_p9), %s229_s23, 4  ;;  %s230_s5 = scalar_lea.sflag (!%p1189_p9), [#allocation4], %s229_s23 }
  0x41   : > { %s233_s6 = scalar_lea.vmem (!%p1189_p9), [#allocation3], %s1244_s29  ;;  %p1294_p5 = scmp.ne.s32.totalorder (!%p1189_p9), %s1291_s27, 0 }
  0x44   : > { %1077 = dma.done.wait (%p1294_p5), %s230_s5, 256  }
  0x45   : > { %1079 = vsyncadd (%p1294_p5), %s230_s5, 4294967040  ;;  %p1295_p8 = scmp.ne.s32.totalorder %s1290_s26, 0 }
  0x47   : > { %1081 = dma.done.wait (%p1295_p8), [#allocation6], 4608  }
  0x48   : > { %1083 = vsyncadd (%p1295_p8), [#allocation6], 4294962688  ;;  %v1110_v0 = vmov 0   ;;  %v950_v1 = vld [vmem:[#allocation5 + $0xe4] ss:$16 sps:$4 sm:$0xff]   ;;  %v999_v34 = vld [vmem:[%s233_s6 + $0x8] sm:$0xff]   ;;  %v594_v35 = vlaneseq }
  0x49   : > { %514 = vmatprep.mubr.bf16.mxu0 %v1110_v0  ;;  %567 = vmatprep.mubr.bf16.mxu1 %v1110_v0  ;;  %v952_v2 = vld [vmem:[#allocation5 + $0xec] ss:$16 sps:$4 sm:$0xff]   ;;  %v954_v3 = vld [vmem:[#allocation5 + $0xe0] ss:$16 sps:$4 sm:$0xff]   ;;  %v955_v4 = vld [vmem:[#allocation5 + $0xe8] ss:$16 sps:$4 sm:$0xff]  }
  0x4a   : > { %482 = vmatprep.subr.bf16.mxu0 %v950_v1  ;;  %535 = vmatprep.subr.bf16.mxu1 %v952_v2  ;;  %v956_v5 = vld [vmem:[#allocation5 + $0xc4] ss:$16 sps:$4 sm:$0xff]   ;;  %v958_v6 = vld [vmem:[#allocation5 + $0xcc] ss:$16 sps:$4 sm:$0xff]   ;;  %v960_v7 = vld [vmem:[#allocation5 + $0xc0] ss:$16 sps:$4 sm:$0xff]  }
  0x4b   : > { %483 = vmatpush1.bf16.msra.mxu0 %v954_v3  ;;  %536 = vmatpush1.bf16.msra.mxu1 %v955_v4  ;;  %v961_v8 = vld [vmem:[#allocation5 + $0xc8] ss:$16 sps:$4 sm:$0xff]   ;;  %v962_v9 = vld [vmem:[#allocation5 + $0xa4] ss:$16 sps:$4 sm:$0xff]   ;;  %v964_v10 = vld [vmem:[#allocation5 + $0xac] ss:$16 sps:$4 sm:$0xff]  }
  0x4c   : > { %484 = vmatprep.subr.bf16.mxu0 %v956_v5  ;;  %537 = vmatprep.subr.bf16.mxu1 %v958_v6  ;;  %v966_v11 = vld [vmem:[#allocation5 + $0xa0] ss:$16 sps:$4 sm:$0xff]   ;;  %v967_v12 = vld [vmem:[#allocation5 + $0xa8] ss:$16 sps:$4 sm:$0xff]   ;;  %v968_v13 = vld [vmem:[#allocation5 + $0x84] ss:$16 sps:$4 sm:$0xff]  }
  0x4d   : > { %v970_v14 = vld [vmem:[#allocation5 + $0x8c] ss:$16 sps:$4 sm:$0xff]   ;;  %v972_v15 = vld [vmem:[#allocation5 + $0x80] ss:$16 sps:$4 sm:$0xff]   ;;  %v973_v16 = vld [vmem:[#allocation5 + $0x88] ss:$16 sps:$4 sm:$0xff]  }
  0x4e   : > { %v974_v17 = vld [vmem:[#allocation5 + $0x64] ss:$16 sps:$4 sm:$0xff]   ;;  %v976_v18 = vld [vmem:[#allocation5 + $0x6c] ss:$16 sps:$4 sm:$0xff]   ;;  %v978_v19 = vld [vmem:[#allocation5 + $0x60] ss:$16 sps:$4 sm:$0xff]  }
  0x4f   : > { %485 = vmatpush1.bf16.msra.mxu0 %v960_v7  ;;  %538 = vmatpush1.bf16.msra.mxu1 %v961_v8  ;;  %v979_v20 = vld [vmem:[#allocation5 + $0x68] ss:$16 sps:$4 sm:$0xff]   ;;  %v980_v21 = vld [vmem:[#allocation5 + $0x44] ss:$16 sps:$4 sm:$0xff]   ;;  %v982_v22 = vld [vmem:[#allocation5 + $0x4c] ss:$16 sps:$4 sm:$0xff]  }
  0x50   : > { %486 = vmatprep.subr.bf16.mxu0 %v962_v9  ;;  %539 = vmatprep.subr.bf16.mxu1 %v964_v10  ;;  %v984_v23 = vld [vmem:[#allocation5 + $0x40] ss:$16 sps:$4 sm:$0xff]   ;;  %v985_v24 = vld [vmem:[#allocation5 + $0x48] ss:$16 sps:$4 sm:$0xff]   ;;  %v986_v25 = vld [vmem:[#allocation5 + $0x24] ss:$16 sps:$4 sm:$0xff]  }
  0x51   : > { %v988_v26 = vld [vmem:[#allocation5 + $0x2c] ss:$16 sps:$4 sm:$0xff]   ;;  %v990_v27 = vld [vmem:[#allocation5 + $0x20] ss:$16 sps:$4 sm:$0xff]   ;;  %v991_v28 = vld [vmem:[#allocation5 + $0x28] ss:$16 sps:$4 sm:$0xff]  }
  0x52   : > { %v992_v29 = vld [vmem:[#allocation5 + $0x4] ss:$16 sps:$4 sm:$0xff]   ;;  %v994_v30 = vld [vmem:[#allocation5 + $0xc] ss:$16 sps:$4 sm:$0xff]   ;;  %v996_v31 = vld [vmem:[#allocation5] ss:$16 sps:$4 sm:$0xff]  }
  0x53   : > { %487 = vmatpush1.bf16.msra.mxu0 %v966_v11  ;;  %540 = vmatpush1.bf16.msra.mxu1 %v967_v12  ;;  %v997_v32 = vld [vmem:[#allocation5 + $0x8] ss:$16 sps:$4 sm:$0xff]   ;;  %v998_v33 = vld [vmem:[%s233_s6] sm:$0xff]   ;;  %v595_v36 = vshrl.u32 %v594_v35, 7  ;;  %s722_s25 = sld [smem:[#allocation2]]  ;;  %s840_s26 = sshll.u32 %s825_s3, 1 }
  0x54   : > { %488 = vmatprep.subr.bf16.mxu0 %v968_v13  ;;  %541 = vmatprep.subr.bf16.mxu1 %v970_v14  ;;  %v588_v38 = vld [vmem:[#allocation7] ss:$8 sm:$0xf]  ;;  %v590_v49 = vld [vmem:[#allocation7 + $0x1] ss:$8 sm:$0xf] }
  0x55   : > { %v596_v37 = vsub.s32 0, %v595_v36  ;;  %v604_v39 = vsub.s32 2, %v595_v36  ;;  %v600_v42 = vsub.s32 1, %v595_v36  ;;  %v608_v45 = vsub.s32 3, %v595_v36  ;;  %p268_p4 = scmp.lt.s32.totalorder %s840_s26, 3 }
  0x56   : > { %v592_v59 = vld [vmem:[#allocation7 + $0x2] ss:$8 sm:$0xf]  ;;  %vm736_vm0 = vcmask 7168  }
  0x57   : > { %489 = vmatpush1.bf16.msra.mxu0 %v972_v15  ;;  %542 = vmatpush1.bf16.msra.mxu1 %v973_v16  ;;  %v597_v40 = vrot.slane %v588_v38, %v596_v37  ;;  %v605_v41 = vrot.slane %v588_v38, %v604_v39  ;;  %v601_v51 = vrot.slane %v588_v38, %v600_v42  ;;  %s1301_s26 = smov (!%p268_p4, %s840_s26), 3 }
  0x58   : > { %490 = vmatprep.subr.bf16.mxu0 %v974_v17  ;;  %543 = vmatprep.subr.bf16.mxu1 %v976_v18  ;;  %v609_v52 = vrot.slane %v588_v38, %v608_v45  ;;  %v650_v56 = vrot.slane %v590_v49, %v596_v37  ;;  %v658_v61 = vrot.slane %v590_v49, %v604_v39  ;;  %s841_s27 = sshll.u32 %s1301_s26, 3 }
  0x59   : > { %v654_v63 = vrot.slane %v590_v49, %v600_v42  ;;  %v662_v1 = vrot.slane %v590_v49, %v608_v45  ;;  %v679_v5 = vrot.slane %v592_v59, %v596_v37  ;;  %v687_v7 = vrot.slane %v592_v59, %v604_v39  ;;  %s271_s30 = scalar_lea.vmem %s1285_s4, %s841_s27 }
  0x5a   : > { %v683_v11 = vrot.slane %v592_v59, %v600_v42  ;;  %v691_v13 = vrot.slane %v592_v59, %v608_v45 }
  0x5b   : > { %491 = vmatpush1.bf16.msra.mxu0 %v978_v19  ;;  %544 = vmatpush1.bf16.msra.mxu1 %v979_v20 }
  0x5c   : > { %492 = vmatprep.subr.bf16.mxu0 %v980_v21  ;;  %545 = vmatprep.subr.bf16.mxu1 %v982_v22 }
  0x5f   : > { %493 = vmatpush1.bf16.msra.mxu0 %v984_v23  ;;  %546 = vmatpush1.bf16.msra.mxu1 %v985_v24 }
  0x60   : > { %494 = vmatprep.subr.bf16.mxu0 %v986_v25  ;;  %547 = vmatprep.subr.bf16.mxu1 %v988_v26 }
  0x63   : > { %495 = vmatpush1.bf16.msra.mxu0 %v990_v27  ;;  %548 = vmatpush1.bf16.msra.mxu1 %v991_v28 }
  0x64   : > { %496 = vmatprep.subr.bf16.mxu0 %v992_v29  ;;  %549 = vmatprep.subr.bf16.mxu1 %v994_v30 }
  0x67   : > { %497 = vmatpush1.bf16.msra.mxu0 %v996_v31  ;;  %550 = vmatpush1.bf16.msra.mxu1 %v997_v32 }
  0x6a   : > { %515 = vmatmul.mubr.bf16.vlgmr.msra.gmra.mxu0 %v998_v33  ;;  %568 = vmatmul.mubr.bf16.vlgmr.msra.gmra.mxu1 %v998_v33 }
  0x6b   : > { %524 = vmatprep.mubr.bf16.mxu0 %v1110_v0  ;;  %577 = vmatprep.mubr.bf16.mxu1 %v1110_v0 }
  0x72   : > { %525 = vmatmul.mubr.bf16.gmra.mxu0 %v999_v34  ;;  %578 = vmatmul.mubr.bf16.gmra.mxu1 %v999_v34 }
 0x12a   : > { %v516_v43 = vpop.f32.mrf.mxu0  ;;  %v569_v44 = vpop.f32.mrf.mxu1 }
 0x12b   : > { %v614_v46 = vadd.f32 %v597_v40, %v516_v43  ;;  %v616_v50 = vadd.f32 %v605_v41, %v569_v44 }
 0x12c   : > { %v518_v47 = vpop.f32.mrf.mxu0  ;;  %v571_v48 = vpop.f32.mrf.mxu1 }
 0x12d   : > { %v622_v55 = vmax.f32 %v614_v46, 0.0  ;;  %v624_v60 = vmax.f32 %v616_v50, 0.0  ;;  %v615_v62 = vadd.f32 %v601_v51, %v518_v47  ;;  %v617_v0 = vadd.f32 %v609_v52, %v571_v48 }
 0x12e   : > { %v520_v53 = vpop.f32.mrf.mxu0  ;;  %v573_v54 = vpop.f32.mrf.mxu1 }
 0x12f   : > { %v667_v8 = vmul.f32 %v650_v56, %v622_v55  ;;  %v618_v9 = vadd.f32 %v597_v40, %v520_v53  ;;  %v669_v14 = vmul.f32 %v658_v61, %v624_v60  ;;  %v623_v15 = vmax.f32 %v615_v62, 0.0 }
 0x130   : > { %v522_v57 = vpop.f32.mrf.mxu0  ;;  %v575_v58 = vpop.f32.mrf.mxu1  ;;  %v625_v18 = vmax.f32 %v617_v0, 0.0  ;;  %v620_v24 = vadd.f32 %v605_v41, %v573_v54 }
 0x131   : > { %v619_v16 = vadd.f32 %v601_v51, %v522_v57  ;;  %v621_v25 = vadd.f32 %v609_v52, %v575_v58  ;;  %v626_v28 = vmax.f32 %v618_v9, 0.0  ;;  %v668_v38 = vmul.f32 %v654_v63, %v623_v15 }
 0x132   : > { %v526_v2 = vpop.f32.mrf.mxu0  ;;  %v579_v3 = vpop.f32.mrf.mxu1  ;;  %v628_v44 = vmax.f32 %v620_v24, 0.0  ;;  %v670_v57 = vmul.f32 %v662_v1, %v625_v18 }
 0x133   : > { %v630_v4 = vadd.f32 %v597_v40, %v526_v2  ;;  %v632_v6 = vadd.f32 %v605_v41, %v579_v3  ;;  %v627_v34 = vmax.f32 %v619_v16, 0.0  ;;  %v629_v45 = vmax.f32 %v621_v25, 0.0 }
 0x134   : > { %v528_v10 = vpop.f32.mrf.mxu0  ;;  %v581_v12 = vpop.f32.mrf.mxu1  ;;  %v671_v50 = vmul.f32 %v650_v56, %v626_v28 }
 0x135   : > { %v638_v17 = vmax.f32 %v630_v4, 0.0  ;;  %v640_v19 = vmax.f32 %v632_v6, 0.0  ;;  %v631_v20 = vadd.f32 %v601_v51, %v528_v10  ;;  %v633_v21 = vadd.f32 %v609_v52, %v581_v12 }
 0x136   : > { %v530_v22 = vpop.f32.mrf.mxu0  ;;  %v583_v23 = vpop.f32.mrf.mxu1  ;;  %v672_v53 = vmul.f32 %v654_v63, %v627_v34  ;;  %v674_v3 = vmul.f32 %v662_v1, %v629_v45  ;;  %v723_v63 = vstv %s722_s25 }
 0x137   : > { %v634_v26 = vadd.f32 %v597_v40, %v530_v22  ;;  %v636_v27 = vadd.f32 %v605_v41, %v583_v23  ;;  %v696_v29 = vmul.f32 %v679_v5, %v638_v17  ;;  %v639_v30 = vmax.f32 %v631_v20, 0.0 }
 0x138   : > { %v641_v31 = vmax.f32 %v633_v21, 0.0  ;;  %v532_v32 = vpop.f32.mrf.mxu0  ;;  %v585_v33 = vpop.f32.mrf.mxu1  ;;  %v698_v39 = vmul.f32 %v687_v7, %v640_v19 }
 0x139   : > { %v642_v35 = vmax.f32 %v634_v26, 0.0  ;;  %v644_v36 = vmax.f32 %v636_v27, 0.0  ;;  %v635_v37 = vadd.f32 %v601_v51, %v532_v32  ;;  %v697_v42 = vmul.f32 %v683_v11, %v639_v30 }
 0x13a   : > { %v637_v43 = vadd.f32 %v609_v52, %v585_v33  ;;  %v704_v40 = vadd.f32 %v696_v29, %v667_v8  ;;  %v699_v48 = vmul.f32 %v691_v13, %v641_v31  ;;  %v706_v58 = vadd.f32 %v698_v39, %v669_v14 }
 0x13b   : > { %v700_v46 = vmul.f32 %v679_v5, %v642_v35  ;;  %v643_v47 = vmax.f32 %v635_v37, 0.0  ;;  %v705_v41 = vadd.f32 %v697_v42, %v668_v38  ;;  %v702_v54 = vmul.f32 %v687_v7, %v644_v36 }
 0x13c   : > { %v645_v49 = vmax.f32 %v637_v43, 0.0  ;;  %v673_v51 = vmul.f32 %v658_v61, %v628_v44  ;;  %v707_v52 = vadd.f32 %v699_v48, %v670_v57 }
 0x13d   : > { %v701_v55 = vmul.f32 %v683_v11, %v643_v47  ;;  %v712_v59 = vadd.f32 %v705_v41, %v704_v40  ;;  %v708_v60 = vadd.f32 %v700_v46, %v671_v50 }
 0x13e   : > { %v703_v0 = vmul.f32 %v691_v13, %v645_v49  ;;  %v710_v4 = vadd.f32 %v702_v54, %v673_v51 }
 0x13f   : > { %v709_v62 = vadd.f32 %v701_v55, %v672_v53  ;;  %v713_v2 = vadd.f32 %v712_v59, %v706_v58 }
 0x140   : > { %v711_v8 = vadd.f32 %v703_v0, %v674_v3 }
 0x141   : > { %v717_v5 = vadd.f32 %v709_v62, %v708_v60  ;;  %v714_v6 = vadd.f32 %v713_v2, %v707_v52 }
 0x143   : > { %v718_v9 = vadd.f32 %v717_v5, %v710_v4  ;;  %715 = vadd.xlane.f32.xlu0 %v714_v6 }
 0x145   : > { %v719_v56 = vadd.f32 %v718_v9, %v711_v8 }
 0x147   : > { %720 = vadd.xlane.f32.xlu0 %v719_v56 }
 0x1cc   : > { %v716_v7 = vpop.xlane.xlu0 %715 }
 0x1cd   : > { %v724_v10 = vadd.f32 %v723_v63, %v716_v7 }
 0x1cf   : > { %v726_v61 = vsub.f32 0.0, %v724_v10 }
 0x1d0   : > { %v721_v11 = vpop.xlane.xlu0 %720 }
 0x1d1   : > { %v728_v12 = vmul.f32 1.442695, %v726_v61  ;;  %v725_v13 = vadd.f32 %v723_v63, %v721_v11 }
 0x1d3   : > { %1000 = vpow2.f32 %v728_v12  ;;  %v727_v14 = vsub.f32 0.0, %v725_v13 }
 0x1d5   : > { %v730_v1 = vmul.f32 1.442695, %v727_v14 }
 0x1d7   : > { %1002 = vpow2.f32 %v730_v1 }
 0x1e0   : > { %v1001_v15 = vpop.eup %1000 }
 0x1e1   : > { %v732_v16 = vadd.f32 1.0, %v1001_v15 }
 0x1e3   : > { %1004 = vrcp.f32 %v732_v16 }
 0x1e4   : > { %v1003_v17 = vpop.eup %1002 }
 0x1e5   : > { %v733_v18 = vadd.f32 1.0, %v1003_v17 }
 0x1e7   : > { %1006 = vrcp.f32 %v733_v18 }
 0x1f0   : > { %v1005_v19 = vpop.eup %1004 }
 0x1f1   : > { %737 = vst.msk [vmem:[%s271_s30] sm:$0xff] %vm736_vm0, %v1005_v19 }
 0x1f4   : > { %v1007_v20 = vpop.eup %1006 }
 0x1f5   : > { %738 = vst.msk [vmem:[%s271_s30 + $0x8] sm:$0xff] %vm736_vm0, %v1007_v20 }
 0x1f6 PF: > { %p16_p9 = scmp.ge.s32.totalorder %s1159_s21, 4   ;;  %s1296_s17 = smov %s1090_s18 }
 0x1f7   : > { %s1297_s18 = smov %s1094_s19  ;;  %s1298_s19 = smov %s1169_s24 }
 0x1f8   : > { %s1299_s20 = smov %s1159_s21  ;;  %18 = sbr.rel (!%p16_p9) target bundleno = 6 (0x6), region = 91 }
 0x1fd   :  { %761 = vsyncpa [#allocation4], 1 }
 0x1fe   :  { %763 = vsyncpa [#allocation4 + $0x1], 1 }
 0x1ff   :  { %764 = vsyncpa [#allocation6], 1 }

</bundles_post_ra>
